<compile_context>
chip_gen: v7x
topology: tpu7x:2x2x1
jax: 0.10.0
libtpu: 0.0.40
codegen_flags: <defaults>
</compile_context>

<pallas_src>
import jax
import jax.numpy as jnp
from jax.experimental import pallas as pl
from jax.experimental.pallas import tpu as pltpu


def _leaky_relu(x, slope=0.2):
    return jnp.where(x >= 0, x, slope * x)


def _hidden(x, w1_ref, b1_ref, w2_ref):
    """conv1 -> LeakyReLU -> conv2 on one channel-major [Cin, tile] block."""
    # bf16 MXU inputs, fp32 accumulation; bias / activation in fp32.
    h1 = jnp.dot(w1_ref[...], x, preferred_element_type=jnp.float32)   # [ndf, tm]
    h1 = _leaky_relu(h1 + b1_ref[...])
    h2 = jnp.dot(w2_ref[...], h1.astype(jnp.bfloat16),
                 preferred_element_type=jnp.float32)                   # [2ndf, tm]
    return h2


def _stats_kernel(x_ref, w1_ref, b1_ref, w2_ref, sum_ref, ssq_ref):
    """Phase 1: accumulate per-channel sum / sum-of-squares of h2."""
    @pl.when(jnp.logical_and(pl.program_id(0) == 0, pl.program_id(1) == 0))
    def _():
        sum_ref[...] = jnp.zeros_like(sum_ref)
        ssq_ref[...] = jnp.zeros_like(ssq_ref)

    h2 = _hidden(x_ref[...], w1_ref, b1_ref, w2_ref)        # [2ndf, tm] f32
    sum_ref[...] += jnp.sum(h2, axis=1, keepdims=True)       # [2ndf, 1]
    ssq_ref[...] += jnp.sum(h2 * h2, axis=1, keepdims=True)  # [2ndf, 1]


def _apply_kernel(x_ref, w1_ref, b1_ref, w2_ref, scale_ref, shift_ref, w3_ref,
                  o_ref):
    """Phase 2: recompute h2, apply folded BN + LeakyReLU, conv3, store."""
    h2 = _hidden(x_ref[...], w1_ref, b1_ref, w2_ref)         # [2ndf, tm] f32
    h2n = _leaky_relu(h2 * scale_ref[...] + shift_ref[...])  # folded BN
    out = jnp.dot(w3_ref[...], h2n.astype(jnp.bfloat16),
                  preferred_element_type=jnp.float32)        # [1, tm] lane-dense
    o_ref[...] = out.astype(o_ref.dtype)


def _pick_tile_m(hw):
    for t in (2048, 1024, 512, 256, 128):
        if hw % t == 0:
            return t
    return hw   # small / irregular spatial extent: whole row (full-dim block)


def pixel_discriminator(x_nchw, params, tile_m=None):
    """x_nchw: [N, Cin, H, W] float32. Returns [N, 1, H, W] float32."""
    w1, b1, w2, gamma, beta, w3 = params
    n, cin, h, w = x_nchw.shape
    hw = h * w
    ndf, ndf2 = w1.shape[0], w2.shape[0]

    tm = tile_m if tile_m is not None else _pick_tile_m(hw)
    assert hw % tm == 0, (hw, tm)
    n_tiles = hw // tm

    # NCHW -> [N, Cin, H*W]: pure reshape (same memory layout), then bf16 for
    # the MXU path (halves HBM traffic on the dominant x read).
    x_cm = x_nchw.reshape(n, cin, hw).astype(jnp.bfloat16)
    w1_b = w1.astype(jnp.bfloat16)
    w2_b = w2.astype(jnp.bfloat16)
    w3_b = w3.astype(jnp.bfloat16)

    def full(shape):
        return pl.BlockSpec(shape, lambda ni, ti: (0,) * len(shape))

    x_spec = pl.BlockSpec((None, cin, tm), lambda ni, ti: (ni, 0, ti))

    def cparams(sem):
        # Working set per step is a few MB at tm<=2048; 32 MiB leaves headroom
        # for double buffering on every generation (and is safe on v5e/v7x).
        return pltpu.CompilerParams(dimension_semantics=sem,
                                    vmem_limit_bytes=32 * 1024 * 1024)

    # ---- phase 1: per-channel sum / sum-of-squares of h2 over all pixels ----
    sums, ssqs = pl.pallas_call(
        _stats_kernel,
        out_shape=(jax.ShapeDtypeStruct((ndf2, 1), jnp.float32),
                   jax.ShapeDtypeStruct((ndf2, 1), jnp.float32)),
        grid=(n, n_tiles),
        in_specs=[x_spec, full((ndf, cin)), full((ndf, 1)), full((ndf2, ndf))],
        out_specs=(full((ndf2, 1)), full((ndf2, 1))),
        compiler_params=cparams(("arbitrary", "arbitrary")),
    )(x_cm, w1_b, b1, w2_b)

    # ---- fold training-mode BatchNorm (biased variance, eps=1e-5) into a
    # per-channel scale/shift: tiny [2ndf, 1] math done in plain JAX ----------
    m_total = jnp.float32(n * hw)
    mean = sums / m_total
    var = jnp.maximum(ssqs / m_total - mean * mean, 0.0)
    scale = gamma * jax.lax.rsqrt(var + 1e-5)
    shift = beta - mean * scale

    # ---- phase 2: normalize + LeakyReLU + conv3, lane-dense output ----------
    out = pl.pallas_call(
        _apply_kernel,
        out_shape=jax.ShapeDtypeStruct((n, 1, hw), jnp.float32),
        grid=(n, n_tiles),
        in_specs=[x_spec, full((ndf, cin)), full((ndf, 1)), full((ndf2, ndf)),
                  full((ndf2, 1)), full((ndf2, 1)), full((1, ndf2))],
        out_specs=pl.BlockSpec((None, 1, tm), lambda ni, ti: (ni, 0, ti)),
        compiler_params=cparams(("parallel", "parallel")),
    )(x_cm, w1_b, b1, w2_b, scale, shift, w3_b)

    # [N, 1, H*W] -> [N, 1, H, W]  (free reshape)
    return out.reshape(n, 1, h, w)


def init_params(key, input_nc, ndf=64):
    """Deterministic synthetic parameters in channel-major matmul form.

    PyTorch 1x1 conv weights are [out, in, 1, 1]; squeezing the trailing 1x1
    gives exactly the [out, in] matrices used here.
    """
    k1, k2, k3, k4 = jax.random.split(key, 4)
    w1 = jax.random.normal(k1, (ndf, input_nc), jnp.float32) * 0.1
    b1 = jax.random.normal(k2, (ndf, 1), jnp.float32) * 0.1
    w2 = jax.random.normal(k3, (ndf * 2, ndf), jnp.float32) * 0.1
    gamma = jnp.ones((ndf * 2, 1), jnp.float32)   # BatchNorm2d affine defaults
    beta = jnp.zeros((ndf * 2, 1), jnp.float32)
    w3 = jax.random.normal(k4, (1, ndf * 2), jnp.float32) * 0.1
    return (w1, b1, w2, gamma, beta, w3)


def reference_jax(x_nchw, params):
    """Pure-JAX reference with identical numerics (bf16 matmul inputs, fp32
    accumulation and BatchNorm), module semantics otherwise unchanged."""
    w1, b1, w2, gamma, beta, w3 = params
    n, cin, h, w = x_nchw.shape
    bf = lambda a: a.astype(jnp.bfloat16)
    # [Cin, N*H*W] channel-major, columns ordered (n, h*w)
    x = jnp.transpose(x_nchw.reshape(n, cin, h * w), (1, 0, 2)).reshape(cin, -1)
    h1 = jnp.dot(bf(w1), bf(x), preferred_element_type=jnp.float32) + b1
    h1 = jnp.where(h1 >= 0, h1, 0.2 * h1)
    h2 = jnp.dot(bf(w2), bf(h1), preferred_element_type=jnp.float32)
    mean = jnp.mean(h2, axis=1, keepdims=True)
    var = jnp.mean((h2 - mean) ** 2, axis=1, keepdims=True)
    h2n = (h2 - mean) * jax.lax.rsqrt(var + 1e-5) * gamma + beta
    h2n = jnp.where(h2n >= 0, h2n, 0.2 * h2n)
    out = jnp.dot(bf(w3), bf(h2n), preferred_element_type=jnp.float32)  # [1, N*HW]
    return out.reshape(n, h, w)[:, None, :, :]


if __name__ == "__main__":
    key = jax.random.PRNGKey(0)
    kx, kp = jax.random.split(key)

    N, INPUT_NC, H, W = 2, 4, 16, 16
    NDF = 64

    x = jax.random.normal(kx, (N, INPUT_NC, H, W), jnp.float32)
    params = init_params(kp, INPUT_NC, NDF)

    # tile_m=128 -> grid (2, 2) per phase: exercises the tiled accumulation
    # and the pipelined apply pass even at this small demo size.
    out = pixel_discriminator(x, params, tile_m=128)
    out = jax.block_until_ready(out)
    assert out.shape == (N, 1, H, W), out.shape

    ref = reference_jax(x, params)
    err = float(jnp.max(jnp.abs(out - ref)))
    assert err < 2e-3, err

    print("KERNEL_OK")
</pallas_src>

<mosaic_0001>
module attributes {stable_mosaic.version = 11 : i64} {
  func.func @_stats_kernel(%arg0: i32, %arg1: i32, %arg2: memref<1x4x128xbf16, #tpu.memory_space<vmem>>, %arg3: memref<64x4xbf16, #tpu.memory_space<vmem>>, %arg4: memref<64x1xf32, #tpu.memory_space<vmem>>, %arg5: memref<128x64xbf16, #tpu.memory_space<vmem>>, %arg6: memref<128x1xf32, #tpu.memory_space<vmem>>, %arg7: memref<128x1xf32, #tpu.memory_space<vmem>>) attributes {dimension_semantics = [#tpu.dimension_semantics<arbitrary>, #tpu.dimension_semantics<arbitrary>], iteration_bounds = array<i64: 2, 2>, scalar_prefetch = 0 : i64, scratch_operands = 0 : i64, tpu.core_type = #tpu.core_type<tc>, window_params = [{transform_indices = @transform_0, window_bounds = array<i64: 1, 4, 128>}, {pipeline_mode = #tpu.pipeline_mode<synchronous>, transform_indices = @transform_1, window_bounds = array<i64: 64, 4>}, {pipeline_mode = #tpu.pipeline_mode<synchronous>, transform_indices = @transform_2, window_bounds = array<i64: 64, 1>}, {pipeline_mode = #tpu.pipeline_mode<synchronous>, transform_indices = @transform_3, window_bounds = array<i64: 128, 64>}, {pipeline_mode = #tpu.pipeline_mode<synchronous>, transform_indices = @transform_4, window_bounds = array<i64: 128, 1>}, {pipeline_mode = #tpu.pipeline_mode<synchronous>, transform_indices = @transform_5, window_bounds = array<i64: 128, 1>}]} {
    %c0_i32 = arith.constant 0 : i32
    %0 = arith.cmpi eq, %arg0, %c0_i32 : i32
    %c0_i32_0 = arith.constant 0 : i32
    %1 = arith.cmpi eq, %arg1, %c0_i32_0 : i32
    %2 = arith.andi %0, %1 : i1
    %3 = arith.extui %2 : i1 to i32
    %c0_i32_1 = arith.constant 0 : i32
    %4 = arith.cmpi ne, %3, %c0_i32_1 : i32
    scf.if %4 {
      %cst_23 = arith.constant 0.000000e+00 : f32
      %31 = vector.broadcast %cst_23 : f32 to vector<128x1xf32>
      %c0_24 = arith.constant 0 : index
      %c0_25 = arith.constant 0 : index
      %32 = vector.load %arg6[%c0_24, %c0_25] : memref<128x1xf32, #tpu.memory_space<vmem>>, vector<128x1xf32>
      tpu.vector_store %arg6[%c0_24, %c0_25], %31 {strides = array<i32>} : memref<128x1xf32, #tpu.memory_space<vmem>>, vector<128x1xf32>,
      %cst_26 = arith.constant 0.000000e+00 : f32
      %33 = vector.broadcast %cst_26 : f32 to vector<128x1xf32>
      %c0_27 = arith.constant 0 : index
      %c0_28 = arith.constant 0 : index
      %34 = vector.load %arg7[%c0_27, %c0_28] : memref<128x1xf32, #tpu.memory_space<vmem>>, vector<128x1xf32>
      tpu.vector_store %arg7[%c0_27, %c0_28], %33 {strides = array<i32>} : memref<128x1xf32, #tpu.memory_space<vmem>>, vector<128x1xf32>,
    } else {
    }
    %c0 = arith.constant 0 : index
    %c0_2 = arith.constant 0 : index
    %c0_3 = arith.constant 0 : index
    %5 = vector.load %arg2[%c0, %c0_2, %c0_3] : memref<1x4x128xbf16, #tpu.memory_space<vmem>>, vector<1x4x128xbf16>
    %6 = vector.shape_cast %5 : vector<1x4x128xbf16> to vector<4x128xbf16>
    %c0_4 = arith.constant 0 : index
    %c0_5 = arith.constant 0 : index
    %7 = vector.load %arg3[%c0_4, %c0_5] : memref<64x4xbf16, #tpu.memory_space<vmem>>, vector<64x4xbf16>
    %cst = arith.constant dense<0.000000e+00> : vector<64x128xf32>
    %8 = tpu.matmul %7, %6, %cst {dimension_numbers = #tpu.dot_dimension_numbers<[1], [0], [0], [1], [0, 0, 1, 1], [], []>} : vector<64x4xbf16>, vector<4x128xbf16>, vector<64x128xf32> -> vector<64x128xf32>
    %c0_6 = arith.constant 0 : index
    %c0_7 = arith.constant 0 : index
    %9 = vector.load %arg4[%c0_6, %c0_7] : memref<64x1xf32, #tpu.memory_space<vmem>>, vector<64x1xf32>
    %10 = vector.broadcast %9 : vector<64x1xf32> to vector<64x128xf32>
    %11 = arith.addf %8, %10 : vector<64x128xf32>
    %cst_8 = arith.constant 0.000000e+00 : f32
    %12 = vector.broadcast %cst_8 : f32 to vector<64x128xf32>
    %13 = arith.cmpf oge, %11, %12 : vector<64x128xf32>
    %cst_9 = arith.constant 2.000000e-01 : f32
    %14 = vector.broadcast %cst_9 : f32 to vector<64x128xf32>
    %15 = arith.mulf %14, %11 : vector<64x128xf32>
    %16 = arith.select %13, %11, %15 : vector<64x128xi1>, vector<64x128xf32>
    %c0_10 = arith.constant 0 : index
    %c0_11 = arith.constant 0 : index
    %17 = vector.load %arg5[%c0_10, %c0_11] : memref<128x64xbf16, #tpu.memory_space<vmem>>, vector<128x64xbf16>
    %18 = arith.truncf %16 : vector<64x128xf32> to vector<64x128xbf16>
    %cst_12 = arith.constant dense<0.000000e+00> : vector<128x128xf32>
    %19 = tpu.matmul %17, %18, %cst_12 {dimension_numbers = #tpu.dot_dimension_numbers<[1], [0], [0], [1], [0, 0, 1, 1], [], []>} : vector<128x64xbf16>, vector<64x128xbf16>, vector<128x128xf32> -> vector<128x128xf32>
    %c0_13 = arith.constant 0 : index
    %c0_14 = arith.constant 0 : index
    %20 = vector.load %arg6[%c0_13, %c0_14] : memref<128x1xf32, #tpu.memory_space<vmem>>, vector<128x1xf32>
    %cst_15 = arith.constant dense<0.000000e+00> : vector<128xf32>
    %21 = vector.multi_reduction <add>, %19, %cst_15 [1] : vector<128x128xf32> to vector<128xf32>
    %22 = vector.shape_cast %21 : vector<128xf32> to vector<128x1xf32>
    %23 = arith.addf %20, %22 : vector<128x1xf32>
    %c0_16 = arith.constant 0 : index
    %c0_17 = arith.constant 0 : index
    %24 = vector.load %arg6[%c0_16, %c0_17] : memref<128x1xf32, #tpu.memory_space<vmem>>, vector<128x1xf32>
    tpu.vector_store %arg6[%c0_16, %c0_17], %23 {strides = array<i32>} : memref<128x1xf32, #tpu.memory_space<vmem>>, vector<128x1xf32>,
    %c0_18 = arith.constant 0 : index
    %c0_19 = arith.constant 0 : index
    %25 = vector.load %arg7[%c0_18, %c0_19] : memref<128x1xf32, #tpu.memory_space<vmem>>, vector<128x1xf32>
    %26 = arith.mulf %19, %19 : vector<128x128xf32>
    %cst_20 = arith.constant dense<0.000000e+00> : vector<128xf32>
    %27 = vector.multi_reduction <add>, %26, %cst_20 [1] : vector<128x128xf32> to vector<128xf32>
    %28 = vector.shape_cast %27 : vector<128xf32> to vector<128x1xf32>
    %29 = arith.addf %25, %28 : vector<128x1xf32>
    %c0_21 = arith.constant 0 : index
    %c0_22 = arith.constant 0 : index
    %30 = vector.load %arg7[%c0_21, %c0_22] : memref<128x1xf32, #tpu.memory_space<vmem>>, vector<128x1xf32>
    tpu.vector_store %arg7[%c0_21, %c0_22], %29 {strides = array<i32>} : memref<128x1xf32, #tpu.memory_space<vmem>>, vector<128x1xf32>,
    return
  }
  func.func @transform_0(%arg0: i32, %arg1: i32) -> (i32, i32, i32) {
    %c0_i32 = arith.constant 0 : i32
    %c0_i32_0 = arith.constant 0 : i32
    return %arg0, %c0_i32, %arg1 : i32, i32, i32
  }
  func.func @transform_1(%arg0: i32, %arg1: i32) -> (i32, i32) {
    %c0_i32 = arith.constant 0 : i32
    %c0_i32_0 = arith.constant 0 : i32
    %c0_i32_1 = arith.constant 0 : i32
    return %c0_i32, %c0_i32_0 : i32, i32
  }
  func.func @transform_2(%arg0: i32, %arg1: i32) -> (i32, i32) {
    %c0_i32 = arith.constant 0 : i32
    %c0_i32_0 = arith.constant 0 : i32
    %c0_i32_1 = arith.constant 0 : i32
    return %c0_i32, %c0_i32_0 : i32, i32
  }
  func.func @transform_3(%arg0: i32, %arg1: i32) -> (i32, i32) {
    %c0_i32 = arith.constant 0 : i32
    %c0_i32_0 = arith.constant 0 : i32
    %c0_i32_1 = arith.constant 0 : i32
    return %c0_i32, %c0_i32_0 : i32, i32
  }
  func.func @transform_4(%arg0: i32, %arg1: i32) -> (i32, i32) {
    %c0_i32 = arith.constant 0 : i32
    %c0_i32_0 = arith.constant 0 : i32
    %c0_i32_1 = arith.constant 0 : i32
    return %c0_i32, %c0_i32_0 : i32, i32
  }
  func.func @transform_5(%arg0: i32, %arg1: i32) -> (i32, i32) {
    %c0_i32 = arith.constant 0 : i32
    %c0_i32_0 = arith.constant 0 : i32
    %c0_i32_1 = arith.constant 0 : i32
    return %c0_i32, %c0_i32_0 : i32, i32
  }
}

</mosaic_0001>

<bundles_post_ra>
// kernel: tpu_custom_call.1
= control target key start
LH: loop header
LB: loop body
LE: loop exit
PB: predicated region body
PF: predicated region fallthrough
CT: control target
= control target key end

     0   :  { %s1084_s18 = smov 0   ;;  %s1086_s19 = smov 0   ;;  %s1559_s0 = inlined_call_operand.vmem [shape: bf16[2,4,256], index: 0, kind: input, shape index: {}]   ;;  %s1560_s1 = inlined_call_operand.vmem [shape: bf16[64,4], index: 1, kind: input, shape index: {}]   ;;  %s1561_s2 = inlined_call_operand.vmem [shape: f32[64,1], index: 2, kind: input, shape index: {}]   ;;  %s1562_s3 = inlined_call_operand.vmem [shape: bf16[128,64], index: 3, kind: input, shape index: {}]   ;;  %s1563_s4 = inlined_call_operand.vmem [shape: f32[128,1], index: 4, kind: output, shape index: {0}]   ;;  %s1564_s5 = inlined_call_operand.vmem [shape: f32[128,1], index: 5, kind: output, shape index: {1}]  }
   0x1   :  { %s1088_s20 = smov 0   ;;  %s1090_s21 = smov 0  }
   0x2   :  { %s1092_s22 = smov 0  }
   0x3 LB: > { %s25_s23 = sadd.s32 1, %s1042_s20  ;;  %s28_s24 = sadd.s32 1, %s1046_s21  ;;  %s1050_s22 = sphi %s1092_s22, %s16_s22   ;;  %s1046_s21 = sphi %s1090_s21, %s1568_s21   ;;  %s1042_s20 = sphi %s1088_s20, %s1567_s20   ;;  %s1038_s19 = sphi %s1086_s19, %s1566_s19   ;;  %s1034_s18 = sphi %s1084_s18, %s1565_s18  }
   0x4   : > { %p26_p0 = scmp.ge.s32.totalorder %s25_s23, 2  ;;  %p867_p1 = scmp.ge.s32.totalorder %s1050_s22, 1 }
   0x5   : > { %p197_p2 = scmp.lt.s32.totalorder %s1050_s22, 5 }
   0x6   : > { %s1570_s23 = smov (%p26_p0, %s25_s23), 0  ;;  %s1572_s24 = smov (!%p26_p0, %s28_s24), %s1046_s21 }
   0x7   : > { %p198_p3 = pnand %p867_p1, %p197_p2  ;;  %p30_p4 = scmp.ge.s32.totalorder %s1572_s24, 2 }
   0x8   : > { %p223_p5 = scmp.lt.s32.totalorder (!%p198_p3), %s1038_s19, 1  ;;  %p225_p6 = scmp.lt.s32.totalorder (!%p198_p3), %s1034_s18, 1 }
   0x9   : > { %s1574_s24 = smov (%p30_p4, %s1572_s24), 0  ;;  %201 = sbr.rel (%p198_p3) target bundleno = 698 (0x2ba), region = 36 }
   0xa   : > { %p232_p7 = scmp.eq.s32.totalorder (!%p198_p3), %s1038_s19, 0  ;;  %p233_p8 = scmp.eq.s32.totalorder (!%p198_p3), %s1034_s18, 0 }
   0xc   : > { %p234_p9 = pnand (!%p198_p3), %p233_p8, %p232_p7 }
  0x10   : > { %s1576_s19 = smov (!%p223_p5, %s1038_s19), 1  ;;  %s1578_s18 = smov (!%p225_p6, %s1034_s18), 1 }
  0x11   : > { %s868_s25 = sshll.u32 %s1576_s19, 1  ;;  %237 = sbr.rel (%p234_p9) target bundleno = 34 (0x22), region = 40  ;;  %vm238_vm0 = vcmask (!%p234_p9), 7168   ;;  %v1052_v0 = vmov (!%p234_p9), 0.0  }
  0x12   : > { %s228_s26 = sadd.s32 %s868_s25, %s1578_s18  ;;  %239 = vst.msk [vmem:[%s1563_s4] sm:$0xff] (!%p234_p9), %vm238_vm0, %v1052_v0  ;;  %240 = vst.msk [vmem:[%s1563_s4 + $0x8] sm:$0xff] (!%p234_p9), %vm238_vm0, %v1052_v0 }
  0x13   : > { %s869_s27 = sshll.u32 %s228_s26, 1  ;;  %241 = vst.msk [vmem:[%s1563_s4 + $0x10] sm:$0xff] (!%p234_p9), %vm238_vm0, %v1052_v0  ;;  %242 = vst.msk [vmem:[%s1563_s4 + $0x18] sm:$0xff] (!%p234_p9), %vm238_vm0, %v1052_v0 }
  0x14   : > { %s1117_s30 = scalar_lea.vmem %s1559_s0, %s869_s27  ;;  %243 = vst.msk [vmem:[%s1563_s4 + $0x20] sm:$0xff] (!%p234_p9), %vm238_vm0, %v1052_v0  ;;  %244 = vst.msk [vmem:[%s1563_s4 + $0x28] sm:$0xff] (!%p234_p9), %vm238_vm0, %v1052_v0 }
  0x15   : > { %245 = vst.msk [vmem:[%s1563_s4 + $0x30] sm:$0xff] (!%p234_p9), %vm238_vm0, %v1052_v0  ;;  %246 = vst.msk [vmem:[%s1563_s4 + $0x38] sm:$0xff] (!%p234_p9), %vm238_vm0, %v1052_v0 }
  0x16   : > { %247 = vst.msk [vmem:[%s1563_s4 + $0x40] sm:$0xff] (!%p234_p9), %vm238_vm0, %v1052_v0  ;;  %248 = vst.msk [vmem:[%s1563_s4 + $0x48] sm:$0xff] (!%p234_p9), %vm238_vm0, %v1052_v0 }
  0x17   : > { %249 = vst.msk [vmem:[%s1563_s4 + $0x50] sm:$0xff] (!%p234_p9), %vm238_vm0, %v1052_v0  ;;  %250 = vst.msk [vmem:[%s1563_s4 + $0x58] sm:$0xff] (!%p234_p9), %vm238_vm0, %v1052_v0 }
  0x18   : > { %251 = vst.msk [vmem:[%s1563_s4 + $0x60] sm:$0xff] %vm238_vm0, %v1052_v0  ;;  %252 = vst.msk [vmem:[%s1563_s4 + $0x68] sm:$0xff] %vm238_vm0, %v1052_v0 }
  0x19   : > { %253 = vst.msk [vmem:[%s1563_s4 + $0x70] sm:$0xff] %vm238_vm0, %v1052_v0  ;;  %254 = vst.msk [vmem:[%s1563_s4 + $0x78] sm:$0xff] %vm238_vm0, %v1052_v0 }
  0x1a   : > { %255 = vst.msk [vmem:[%s1564_s5] sm:$0xff] %vm238_vm0, %v1052_v0  ;;  %256 = vst.msk [vmem:[%s1564_s5 + $0x8] sm:$0xff] %vm238_vm0, %v1052_v0 }
  0x1b   : > { %257 = vst.msk [vmem:[%s1564_s5 + $0x10] sm:$0xff] %vm238_vm0, %v1052_v0  ;;  %258 = vst.msk [vmem:[%s1564_s5 + $0x18] sm:$0xff] %vm238_vm0, %v1052_v0 }
  0x1c   : > { %259 = vst.msk [vmem:[%s1564_s5 + $0x20] sm:$0xff] %vm238_vm0, %v1052_v0  ;;  %260 = vst.msk [vmem:[%s1564_s5 + $0x28] sm:$0xff] %vm238_vm0, %v1052_v0 }
  0x1d   : > { %261 = vst.msk [vmem:[%s1564_s5 + $0x30] sm:$0xff] %vm238_vm0, %v1052_v0  ;;  %262 = vst.msk [vmem:[%s1564_s5 + $0x38] sm:$0xff] %vm238_vm0, %v1052_v0 }
  0x1e   : > { %263 = vst.msk [vmem:[%s1564_s5 + $0x40] sm:$0xff] %vm238_vm0, %v1052_v0  ;;  %264 = vst.msk [vmem:[%s1564_s5 + $0x48] sm:$0xff] %vm238_vm0, %v1052_v0 }
  0x1f   : > { %265 = vst.msk [vmem:[%s1564_s5 + $0x50] sm:$0xff] %vm238_vm0, %v1052_v0  ;;  %266 = vst.msk [vmem:[%s1564_s5 + $0x58] sm:$0xff] %vm238_vm0, %v1052_v0 }
  0x20   : > { %267 = vst.msk [vmem:[%s1564_s5 + $0x60] sm:$0xff] %vm238_vm0, %v1052_v0  ;;  %268 = vst.msk [vmem:[%s1564_s5 + $0x68] sm:$0xff] %vm238_vm0, %v1052_v0 }
  0x21   : > { %269 = vst.msk [vmem:[%s1564_s5 + $0x70] sm:$0xff] %vm238_vm0, %v1052_v0  ;;  %270 = vst.msk [vmem:[%s1564_s5 + $0x78] sm:$0xff] %vm238_vm0, %v1052_v0 }
  0x22 PF: > { %v271_v1 = vld [vmem:[%s1117_s30] sm:$0x3]  ;;  %vm361_vm1 = vcmask 1041408   ;;  %vm348_vm2 = vcmask 31744   ;;  %v1001_v4 = vld [vmem:[%s1560_s1 + $0x8] sm:$0xff]   ;;  %v1002_v5 = vld [vmem:[%s1560_s1 + $0x10] sm:$0xff]  }
  0x23   : > { %v1000_v2 = vld [vmem:[%s1560_s1] sm:$0xff]   ;;  %955 = vmatprep.subr.msk.bf16.mxu0 %vm361_vm1, %v271_v1  ;;  %v363_v3 = vsel %vm361_vm1, %v271_v1, 0  ;;  %v1053_v6 = vmov 0   ;;  %v282_v8 = vld [vmem:[%s1561_s2 + $0x10] sm:$0xff]  ;;  %v281_v9 = vld [vmem:[%s1561_s2 + $0x8] sm:$0xff]  ;;  %vm514_vm3 = vcmask 523264  }
  0x24   : > { %914 = vmatpush3.bf16.msra.mxu0 %v363_v3  ;;  %915 = vmatprep.mubr.msk.bf16.mxu0 %vm348_vm2, %v1000_v2  ;;  %v280_v7 = vld [vmem:[%s1561_s2] sm:$0xff]  ;;  %v1003_v10 = vld [vmem:[%s1560_s1 + $0x18] sm:$0xff]   ;;  %v285_v13 = vld [vmem:[%s1561_s2 + $0x28] sm:$0xff]  ;;  %vm700_vm12 = vcmask 7168  }
  0x25   : > { %998 = vset.pattern.permute.xlu0 %v1053_v6  ;;  %999 = vset.pattern.permute.xlu1 %v1053_v6  ;;  %v283_v11 = vld [vmem:[%s1561_s2 + $0x18] sm:$0xff]  ;;  %v284_v12 = vld [vmem:[%s1561_s2 + $0x20] sm:$0xff]  ;;  %v286_v14 = vld [vmem:[%s1561_s2 + $0x30] sm:$0xff] }
  0x26   : > { %290 = vperm.xlu0 %998, %v280_v7   ;;  %300 = vperm.xlu1 %999, %v282_v8   ;;  %v287_v15 = vld [vmem:[%s1561_s2 + $0x38] sm:$0xff]  ;;  %v1004_v16 = vld [vmem:[%s1562_s3] sm:$0xff]   ;;  %v1005_v17 = vld [vmem:[%s1562_s3 + $0x10] sm:$0xff]  }
  0x27   : > { %916 = vmatmul.mubr.msk.bf16.vlgmr.msra.gmra.mrb[0].mxu0 %vm348_vm2, %v1001_v4  ;;  %935 = vmatprep.mubr.msk.bf16.mxu1 %vm514_vm3, %v1005_v17  ;;  %v1006_v62 = vld [vmem:[%s1562_s3 + $0x8] sm:$0xff]   ;;  %v1007_v63 = vld [vmem:[%s1562_s3 + $0x18] sm:$0xff]   ;;  %v1008_v0 = vld [vmem:[%s1562_s3 + $0x20] sm:$0xff]  }
  0x28   : > { %919 = vmatprep.mubr.msk.bf16.mxu0 %vm348_vm2, %v1002_v5  ;;  %v1009_v1 = vld [vmem:[%s1562_s3 + $0x28] sm:$0xff]   ;;  %v1010_v2 = vld [vmem:[%s1562_s3 + $0x30] sm:$0xff]   ;;  %v1011_v3 = vld [vmem:[%s1562_s3 + $0x38] sm:$0xff]  }
  0x2a   : > { %295 = vperm.xlu0 %998, %v281_v9   ;;  %305 = vperm.xlu1 %999, %v283_v11  }
  0x2e   : > { %310 = vperm.xlu0 %998, %v284_v12   ;;  %315 = vperm.xlu1 %999, %v285_v13  }
  0x2f   : > { %920 = vmatmul.mubr.msk.bf16.gmra.mrb[4].mxu0 %vm348_vm2, %v1003_v10 }
  0x30   : > { %931 = vmatprep.mubr.msk.bf16.mxu0 %vm514_vm3, %v1004_v16 }
  0x32   : > { %320 = vperm.xlu0 %998, %v286_v14   ;;  %325 = vperm.xlu1 %999, %v287_v15  }
  0xa5   : > { %v291_v18 = vpop.permute.xlu0 %290  ;;  %v301_v19 = vpop.permute.xlu1 %300 }
  0xa9   : > { %v296_v20 = vpop.permute.xlu0 %295  ;;  %v306_v21 = vpop.permute.xlu1 %305 }
  0xad   : > { %v311_v25 = vpop.permute.xlu0 %310  ;;  %v316_v31 = vpop.permute.xlu1 %315 }
  0xb1   : > { %v321_v38 = vpop.permute.xlu0 %320  ;;  %v326_v46 = vpop.permute.xlu1 %325 }
  0xfa   : > { %v917_v22 = vpop.f32.mrb[0].mxu0 }
  0xfb   : > { %v408_v23 = vadd.f32 %v917_v22, %v301_v19  ;;  %v399_v24 = vpop.f32.mrb[1].mxu0 }
  0xfc   : > { %v400_v26 = vadd.f32 %v399_v24, %v291_v18  ;;  %v918_v27 = vpop.f32.mrb[2].mxu0 }
  0xfd   : > { %v440_v28 = vmul.f32 0.2, %v408_v23  ;;  %v411_v29 = vadd.f32 %v918_v27, %v306_v21  ;;  %v402_v30 = vpop.f32.mrb[3].mxu0  ;;  %vm432_vm4 = vcmp.ge.f32.partialorder %v408_v23, 0.0 }
  0xfe   : > { %v438_v32 = vmul.f32 0.2, %v400_v26  ;;  %v403_v33 = vadd.f32 %v402_v30, %v296_v20  ;;  %vm430_vm5 = vcmp.ge.f32.partialorder %v400_v26, 0.0 }
  0xff   : > { %vm433_vm6 = vcmp.ge.f32.partialorder %v411_v29, 0.0  ;;  %v441_v34 = vmul.f32 0.2, %v411_v29  ;;  %v448_v36 = vsel %vm432_vm4, %v408_v23, %v440_v28 }
 0x100   : > { %vm431_vm7 = vcmp.ge.f32.partialorder %v403_v33, 0.0  ;;  %v439_v35 = vmul.f32 0.2, %v403_v33  ;;  %v446_v39 = vsel %vm430_vm5, %v400_v26, %v438_v32 }
 0x101   : > { %v449_v37 = vsel %vm433_vm6, %v411_v29, %v441_v34 }
 0x102   : > { %v471_v40 = vpack.c.bf16 %v449_v37, %v448_v36  ;;  %v447_v41 = vsel %vm431_vm7, %v403_v33, %v439_v35  ;;  %v921_v42 = vpop.f32.mrb[4].mxu0  ;;  %v642_v36 = vld [vmem:[%s1563_s4 + $0x30] sm:$0xff] }
 0x103   : > { %v470_v43 = vpack.c.bf16 %v447_v41, %v446_v39  ;;  %v424_v44 = vadd.f32 %v921_v42, %v321_v38  ;;  %v415_v45 = vpop.f32.mrb[5].mxu0  ;;  %v638_v37 = vld [vmem:[%s1563_s4 + $0x10] sm:$0xff]  ;;  %v640_v42 = vld [vmem:[%s1563_s4 + $0x20] sm:$0xff] }
 0x104   : > { %v416_v47 = vadd.f32 %v415_v45, %v311_v25  ;;  %v922_v48 = vpop.f32.mrb[6].mxu0 }
 0x105   : > { %v444_v49 = vmul.f32 0.2, %v424_v44  ;;  %v427_v50 = vadd.f32 %v922_v48, %v326_v46  ;;  %v418_v51 = vpop.f32.mrb[7].mxu0  ;;  %923 = vmatprep.subr.bf16.mxu0 %v470_v43  ;;  %947 = vmatprep.subr.bf16.mxu1 %v470_v43  ;;  %vm436_vm8 = vcmp.ge.f32.partialorder %v424_v44, 0.0  ;;  %v719_v48 = vld [vmem:[%s1564_s5 + $0x10] sm:$0xff] }
 0x106   : > { %v442_v52 = vmul.f32 0.2, %v416_v47  ;;  %v419_v53 = vadd.f32 %v418_v51, %v316_v31  ;;  %924 = vmatpush3.bf16.msra.mxu0 %v470_v43  ;;  %951 = vmatpush3.bf16.msra.mxu1 %v470_v43  ;;  %vm434_vm9 = vcmp.ge.f32.partialorder %v416_v47, 0.0  ;;  %v636_v43 = vld [vmem:[%s1563_s4] sm:$0xff] }
 0x107   : > { %vm437_vm10 = vcmp.ge.f32.partialorder %v427_v50, 0.0  ;;  %v445_v54 = vmul.f32 0.2, %v427_v50  ;;  %925 = vmatprep.subr.bf16.mxu0 %v471_v40  ;;  %948 = vmatprep.subr.bf16.mxu1 %v471_v40  ;;  %v452_v56 = vsel %vm436_vm8, %v424_v44, %v444_v49  ;;  %v639_v49 = vld [vmem:[%s1563_s4 + $0x18] sm:$0xff] }
 0x108   : > { %vm435_vm11 = vcmp.ge.f32.partialorder %v419_v53, 0.0  ;;  %v443_v55 = vmul.f32 0.2, %v419_v53  ;;  %v450_v58 = vsel %vm434_vm9, %v416_v47, %v442_v52 }
 0x109   : > { %v453_v57 = vsel %vm437_vm10, %v427_v50, %v445_v54  ;;  %v723_v54 = vld [vmem:[%s1564_s5 + $0x30] sm:$0xff] }
 0x10a   : > { %v473_v59 = vpack.c.bf16 %v453_v57, %v452_v56  ;;  %v451_v60 = vsel %vm435_vm11, %v419_v53, %v443_v55  ;;  %926 = vmatpush3.bf16.msra.mxu0 %v471_v40  ;;  %952 = vmatpush3.bf16.msra.mxu1 %v471_v40  ;;  %v643_v55 = vld [vmem:[%s1563_s4 + $0x38] sm:$0xff] }
 0x10b   : > { %v472_v61 = vpack.c.bf16 %v451_v60, %v450_v58  ;;  %v641_v60 = vld [vmem:[%s1563_s4 + $0x28] sm:$0xff] }
 0x10d   : > { %927 = vmatprep.subr.bf16.mxu0 %v472_v61  ;;  %949 = vmatprep.subr.bf16.mxu1 %v472_v61 }
 0x10e   : > { %928 = vmatpush3.bf16.msra.mxu0 %v472_v61  ;;  %953 = vmatpush3.bf16.msra.mxu1 %v472_v61  ;;  %v637_v61 = vld [vmem:[%s1563_s4 + $0x8] sm:$0xff] }
 0x10f   : > { %929 = vmatprep.subr.bf16.mxu0 %v473_v59  ;;  %950 = vmatprep.subr.bf16.mxu1 %v473_v59 }
 0x112   : > { %930 = vmatpush3.bf16.msra.mxu0 %v473_v59  ;;  %954 = vmatpush3.bf16.msra.mxu1 %v473_v59 }
 0x115   : > { %932 = vmatmul.mubr.msk.bf16.vlgmr.msra.gmra.mrb[8].mxu0 %vm514_vm3, %v1006_v62  ;;  %936 = vmatmul.mubr.msk.bf16.vlgmr.msra.gmra.mrb[0].mxu1 %vm514_vm3, %v1007_v63 }
 0x116   : > { %939 = vmatprep.mubr.msk.bf16.mxu1 %vm514_vm3, %v1008_v0 }
 0x11d   : > { %940 = vmatmul.mubr.msk.bf16.gmra.mrb[4].mxu1 %vm514_vm3, %v1009_v1 }
 0x11e   : > { %943 = vmatprep.mubr.msk.bf16.mxu1 %vm514_vm3, %v1010_v2  ;;  %v720_v2 = vld [vmem:[%s1564_s5 + $0x18] sm:$0xff] }
 0x125   : > { %944 = vmatmul.mubr.msk.bf16.gmra.mrb[8].mxu1 %vm514_vm3, %v1011_v3  ;;  %v717_v3 = vld [vmem:[%s1564_s5] sm:$0xff] }
 0x1e8   : > { %v933_v4 = vpop.f32.mrb[8].mxu0  ;;  %v937_v5 = vpop.f32.mrb[0].mxu1 }
 0x1e9   : > { %664 = vadd.xlane.f32.xlu1 %v937_v5  ;;  %656 = vadd.xlane.f32.xlu0 %v933_v4  ;;  %v573_v6 = vpop.f32.mrb[9].mxu0  ;;  %v589_v7 = vpop.f32.mrb[1].mxu1  ;;  %v735_v12 = vmul.f32 %v933_v4, %v933_v4  ;;  %v739_v16 = vmul.f32 %v937_v5, %v937_v5 }
 0x1ea   : > { %v934_v8 = vpop.f32.mrb[10].mxu0  ;;  %v938_v9 = vpop.f32.mrb[2].mxu1  ;;  %v733_v22 = vmul.f32 %v573_v6, %v573_v6  ;;  %v737_v25 = vmul.f32 %v589_v7, %v589_v7 }
 0x1eb   : > { %v576_v10 = vpop.f32.mrb[11].mxu0  ;;  %v592_v11 = vpop.f32.mrb[3].mxu1  ;;  %v736_v21 = vmul.f32 %v934_v8, %v934_v8  ;;  %v740_v24 = vmul.f32 %v938_v9, %v938_v9 }
 0x1ec   : > { %v734_v26 = vmul.f32 %v576_v10, %v576_v10  ;;  %v738_v27 = vmul.f32 %v592_v11, %v592_v11 }
 0x1ed   : > { %660 = vadd.xlane.f32.xlu1 %v589_v7  ;;  %652 = vadd.xlane.f32.xlu0 %v573_v6 }
 0x1f0   : > { %v941_v13 = vpop.f32.mrb[4].mxu1 }
 0x1f1   : > { %753 = vadd.xlane.f32.xlu1 %v735_v12  ;;  %658 = vadd.xlane.f32.xlu0 %v934_v8  ;;  %v605_v14 = vpop.f32.mrb[5].mxu1  ;;  %v743_v28 = vmul.f32 %v941_v13, %v941_v13  ;;  %v724_v8 = vld [vmem:[%s1564_s5 + $0x38] sm:$0xff] }
 0x1f2   : > { %v942_v15 = vpop.f32.mrb[6].mxu1  ;;  %v741_v29 = vmul.f32 %v605_v14, %v605_v14 }
 0x1f3   : > { %v608_v17 = vpop.f32.mrb[7].mxu1  ;;  %v744_v30 = vmul.f32 %v942_v15, %v942_v15 }
 0x1f4   : > { %v742_v31 = vmul.f32 %v608_v17, %v608_v17 }
 0x1f5   : > { %761 = vadd.xlane.f32.xlu1 %v739_v16  ;;  %666 = vadd.xlane.f32.xlu0 %v938_v9  ;;  %v721_v9 = vld [vmem:[%s1564_s5 + $0x20] sm:$0xff] }
 0x1f8   : > { %v945_v18 = vpop.f32.mrb[8].mxu1 }
 0x1f9   : > { %662 = vadd.xlane.f32.xlu0 %v592_v11  ;;  %654 = vadd.xlane.f32.xlu1 %v576_v10  ;;  %v621_v19 = vpop.f32.mrb[9].mxu1  ;;  %v747_v33 = vmul.f32 %v945_v18, %v945_v18 }
 0x1fa   : > { %v946_v20 = vpop.f32.mrb[10].mxu1  ;;  %v745_v32 = vmul.f32 %v621_v19, %v621_v19 }
 0x1fb   : > { %v624_v23 = vpop.f32.mrb[11].mxu1  ;;  %v748_v35 = vmul.f32 %v946_v20, %v946_v20 }
 0x1fc   : > { %v746_v34 = vmul.f32 %v624_v23, %v624_v23 }
 0x1fd   : > { %755 = vadd.xlane.f32.xlu0 %v736_v21  ;;  %749 = vadd.xlane.f32.xlu1 %v733_v22  ;;  %v722_v21 = vld [vmem:[%s1564_s5 + $0x28] sm:$0xff] }
 0x201   : > { %763 = vadd.xlane.f32.xlu0 %v740_v24  ;;  %757 = vadd.xlane.f32.xlu1 %v737_v25 }
 0x205   : > { %672 = vadd.xlane.f32.xlu1 %v941_v13  ;;  %751 = vadd.xlane.f32.xlu0 %v734_v26  ;;  %v727_v26 = vld [vmem:[%s1564_s5 + $0x50] sm:$0xff] }
 0x209   : > { %668 = vadd.xlane.f32.xlu1 %v605_v14  ;;  %759 = vadd.xlane.f32.xlu0 %v738_v27  ;;  %v646_v14 = vld [vmem:[%s1563_s4 + $0x50] sm:$0xff]  ;;  %v647_v27 = vld [vmem:[%s1563_s4 + $0x58] sm:$0xff] }
 0x20d   : > { %769 = vadd.xlane.f32.xlu1 %v743_v28  ;;  %674 = vadd.xlane.f32.xlu0 %v942_v15  ;;  %v718_v15 = vld [vmem:[%s1564_s5 + $0x8] sm:$0xff] }
 0x211   : > { %765 = vadd.xlane.f32.xlu1 %v741_v29  ;;  %670 = vadd.xlane.f32.xlu0 %v608_v17 }
 0x215   : > { %680 = vadd.xlane.f32.xlu1 %v945_v18  ;;  %771 = vadd.xlane.f32.xlu0 %v744_v30 }
 0x219   : > { %676 = vadd.xlane.f32.xlu1 %v621_v19  ;;  %767 = vadd.xlane.f32.xlu0 %v742_v31 }
 0x21d   : > { %773 = vadd.xlane.f32.xlu1 %v745_v32  ;;  %682 = vadd.xlane.f32.xlu0 %v946_v20  ;;  %v644_v20 = vld [vmem:[%s1563_s4 + $0x40] sm:$0xff] }
 0x21e   : > { %v725_v32 = vld [vmem:[%s1564_s5 + $0x40] sm:$0xff] }
 0x221   : > { %777 = vadd.xlane.f32.xlu1 %v747_v33  ;;  %678 = vadd.xlane.f32.xlu0 %v624_v23  ;;  %v645_v33 = vld [vmem:[%s1563_s4 + $0x48] sm:$0xff] }
 0x225   : > { %775 = vadd.xlane.f32.xlu0 %v746_v34 }
 0x229   : > { %779 = vadd.xlane.f32.xlu0 %v748_v35 }
 0x276   : > { %v665_v38 = vpop.xlane.xlu1 %664  ;;  %v657_v39 = vpop.xlane.xlu0 %656 }
 0x277   : > { %v690_v40 = vadd.f32 %v665_v38, %v642_v36  ;;  %v686_v41 = vadd.f32 %v657_v39, %v638_v37  ;;  %v650_v38 = vld [vmem:[%s1563_s4 + $0x70] sm:$0xff]  ;;  %v728_v39 = vld [vmem:[%s1564_s5 + $0x58] sm:$0xff] }
 0x279   : > { %707 = vst.msk [vmem:[%s1563_s4 + $0x30] sm:$0xff] %vm700_vm12, %v690_v40  ;;  %703 = vst.msk [vmem:[%s1563_s4 + $0x10] sm:$0xff] %vm700_vm12, %v686_v41 }
 0x27a   : > { %v661_v44 = vpop.xlane.xlu1 %660  ;;  %v653_v45 = vpop.xlane.xlu0 %652 }
 0x27b   : > { %v688_v46 = vadd.f32 %v661_v44, %v640_v42  ;;  %v684_v47 = vadd.f32 %v653_v45, %v636_v43  ;;  %v648_v44 = vld [vmem:[%s1563_s4 + $0x60] sm:$0xff]  ;;  %v726_v45 = vld [vmem:[%s1564_s5 + $0x48] sm:$0xff] }
 0x27d   : > { %705 = vst.msk [vmem:[%s1563_s4 + $0x20] sm:$0xff] %vm700_vm12, %v688_v46  ;;  %701 = vst.msk [vmem:[%s1563_s4] sm:$0xff] %vm700_vm12, %v684_v47 }
 0x27e   : > { %v754_v50 = vpop.xlane.xlu1 %753  ;;  %v659_v51 = vpop.xlane.xlu0 %658 }
 0x27f   : > { %v783_v52 = vadd.f32 %v754_v50, %v719_v48  ;;  %v687_v53 = vadd.f32 %v659_v51, %v639_v49  ;;  %v729_v50 = vld [vmem:[%s1564_s5 + $0x60] sm:$0xff]  ;;  %v651_v51 = vld [vmem:[%s1563_s4 + $0x78] sm:$0xff] }
 0x281   : > { %799 = vst.msk [vmem:[%s1564_s5 + $0x10] sm:$0xff] %vm700_vm12, %v783_v52  ;;  %704 = vst.msk [vmem:[%s1563_s4 + $0x18] sm:$0xff] %vm700_vm12, %v687_v53 }
 0x282   : > { %v762_v56 = vpop.xlane.xlu1 %761  ;;  %v667_v57 = vpop.xlane.xlu0 %666 }
 0x283   : > { %v787_v58 = vadd.f32 %v762_v56, %v723_v54  ;;  %v691_v59 = vadd.f32 %v667_v57, %v643_v55  ;;  %v731_v56 = vld [vmem:[%s1564_s5 + $0x70] sm:$0xff]  ;;  %v649_v57 = vld [vmem:[%s1563_s4 + $0x68] sm:$0xff] }
 0x285   : > { %803 = vst.msk [vmem:[%s1564_s5 + $0x30] sm:$0xff] %vm700_vm12, %v787_v58  ;;  %708 = vst.msk [vmem:[%s1563_s4 + $0x38] sm:$0xff] %vm700_vm12, %v691_v59 }
 0x286   : > { %v663_v62 = vpop.xlane.xlu0 %662  ;;  %v655_v63 = vpop.xlane.xlu1 %654 }
 0x287   : > { %v689_v0 = vadd.f32 %v663_v62, %v641_v60  ;;  %v685_v1 = vadd.f32 %v655_v63, %v637_v61  ;;  %v730_v62 = vld [vmem:[%s1564_s5 + $0x68] sm:$0xff] }
 0x289   : > { %706 = vst.msk [vmem:[%s1563_s4 + $0x28] sm:$0xff] %vm700_vm12, %v689_v0  ;;  %702 = vst.msk [vmem:[%s1563_s4 + $0x8] sm:$0xff] %vm700_vm12, %v685_v1  ;;  %v732_v1 = vld [vmem:[%s1564_s5 + $0x78] sm:$0xff] }
 0x28a   : > { %v756_v4 = vpop.xlane.xlu0 %755  ;;  %v750_v5 = vpop.xlane.xlu1 %749 }
 0x28b   : > { %v784_v6 = vadd.f32 %v756_v4, %v720_v2  ;;  %v781_v7 = vadd.f32 %v750_v5, %v717_v3 }
 0x28d   : > { %800 = vst.msk [vmem:[%s1564_s5 + $0x18] sm:$0xff] %vm700_vm12, %v784_v6  ;;  %797 = vst.msk [vmem:[%s1564_s5] sm:$0xff] %vm700_vm12, %v781_v7 }
 0x28e   : > { %v764_v10 = vpop.xlane.xlu0 %763  ;;  %v758_v11 = vpop.xlane.xlu1 %757 }
 0x28f   : > { %v788_v12 = vadd.f32 %v764_v10, %v724_v8  ;;  %v785_v13 = vadd.f32 %v758_v11, %v721_v9 }
 0x291   : > { %804 = vst.msk [vmem:[%s1564_s5 + $0x38] sm:$0xff] %vm700_vm12, %v788_v12  ;;  %801 = vst.msk [vmem:[%s1564_s5 + $0x20] sm:$0xff] %vm700_vm12, %v785_v13 }
 0x292   : > { %v673_v16 = vpop.xlane.xlu1 %672  ;;  %v752_v17 = vpop.xlane.xlu0 %751 }
 0x293   : > { %v694_v18 = vadd.f32 %v673_v16, %v646_v14  ;;  %v782_v19 = vadd.f32 %v752_v17, %v718_v15 }
 0x295   : > { %711 = vst.msk [vmem:[%s1563_s4 + $0x50] sm:$0xff] %vm700_vm12, %v694_v18  ;;  %798 = vst.msk [vmem:[%s1564_s5 + $0x8] sm:$0xff] %vm700_vm12, %v782_v19 }
 0x296   : > { %v669_v22 = vpop.xlane.xlu1 %668  ;;  %v760_v23 = vpop.xlane.xlu0 %759 }
 0x297   : > { %v692_v24 = vadd.f32 %v669_v22, %v644_v20  ;;  %v786_v25 = vadd.f32 %v760_v23, %v722_v21 }
 0x299   : > { %709 = vst.msk [vmem:[%s1563_s4 + $0x40] sm:$0xff] %vm700_vm12, %v692_v24  ;;  %802 = vst.msk [vmem:[%s1564_s5 + $0x28] sm:$0xff] %vm700_vm12, %v786_v25 }
 0x29a   : > { %v770_v28 = vpop.xlane.xlu1 %769  ;;  %v675_v29 = vpop.xlane.xlu0 %674 }
 0x29b   : > { %v791_v30 = vadd.f32 %v770_v28, %v727_v26  ;;  %v695_v31 = vadd.f32 %v675_v29, %v647_v27 }
 0x29d   : > { %807 = vst.msk [vmem:[%s1564_s5 + $0x50] sm:$0xff] %vm700_vm12, %v791_v30  ;;  %712 = vst.msk [vmem:[%s1563_s4 + $0x58] sm:$0xff] %vm700_vm12, %v695_v31 }
 0x29e   : > { %v766_v34 = vpop.xlane.xlu1 %765  ;;  %v671_v35 = vpop.xlane.xlu0 %670 }
 0x29f   : > { %v789_v36 = vadd.f32 %v766_v34, %v725_v32  ;;  %v693_v37 = vadd.f32 %v671_v35, %v645_v33 }
 0x2a1   : > { %805 = vst.msk [vmem:[%s1564_s5 + $0x40] sm:$0xff] %vm700_vm12, %v789_v36  ;;  %710 = vst.msk [vmem:[%s1563_s4 + $0x48] sm:$0xff] %vm700_vm12, %v693_v37 }
 0x2a2   : > { %v681_v40 = vpop.xlane.xlu1 %680  ;;  %v772_v41 = vpop.xlane.xlu0 %771 }
 0x2a3   : > { %v698_v42 = vadd.f32 %v681_v40, %v650_v38  ;;  %v792_v43 = vadd.f32 %v772_v41, %v728_v39 }
 0x2a5   : > { %715 = vst.msk [vmem:[%s1563_s4 + $0x70] sm:$0xff] %vm700_vm12, %v698_v42  ;;  %808 = vst.msk [vmem:[%s1564_s5 + $0x58] sm:$0xff] %vm700_vm12, %v792_v43 }
 0x2a6   : > { %v677_v46 = vpop.xlane.xlu1 %676  ;;  %v768_v47 = vpop.xlane.xlu0 %767 }
 0x2a7   : > { %v696_v48 = vadd.f32 %v677_v46, %v648_v44  ;;  %v790_v49 = vadd.f32 %v768_v47, %v726_v45 }
 0x2a9   : > { %713 = vst.msk [vmem:[%s1563_s4 + $0x60] sm:$0xff] %vm700_vm12, %v696_v48  ;;  %806 = vst.msk [vmem:[%s1564_s5 + $0x48] sm:$0xff] %vm700_vm12, %v790_v49 }
 0x2aa   : > { %v774_v52 = vpop.xlane.xlu1 %773  ;;  %v683_v53 = vpop.xlane.xlu0 %682 }
 0x2ab   : > { %v793_v54 = vadd.f32 %v774_v52, %v729_v50  ;;  %v699_v55 = vadd.f32 %v683_v53, %v651_v51 }
 0x2ad   : > { %809 = vst.msk [vmem:[%s1564_s5 + $0x60] sm:$0xff] %vm700_vm12, %v793_v54  ;;  %716 = vst.msk [vmem:[%s1563_s4 + $0x78] sm:$0xff] %vm700_vm12, %v699_v55 }
 0x2ae   : > { %v778_v58 = vpop.xlane.xlu1 %777  ;;  %v679_v59 = vpop.xlane.xlu0 %678 }
 0x2af   : > { %v795_v60 = vadd.f32 %v778_v58, %v731_v56  ;;  %v697_v61 = vadd.f32 %v679_v59, %v649_v57 }
 0x2b1   : > { %811 = vst.msk [vmem:[%s1564_s5 + $0x70] sm:$0xff] %vm700_vm12, %v795_v60  ;;  %714 = vst.msk [vmem:[%s1563_s4 + $0x68] sm:$0xff] %vm700_vm12, %v697_v61 }
 0x2b2   : > { %v776_v63 = vpop.xlane.xlu0 %775 }
 0x2b3   : > { %v794_v0 = vadd.f32 %v776_v63, %v730_v62 }
 0x2b5   : > { %810 = vst.msk [vmem:[%s1564_s5 + $0x68] sm:$0xff] %vm700_vm12, %v794_v0 }
 0x2b6   : > { %v780_v2 = vpop.xlane.xlu0 %779 }
 0x2b7   : > { %v796_v3 = vadd.f32 %v780_v2, %v732_v1 }
 0x2b9   : > { %812 = vst.msk [vmem:[%s1564_s5 + $0x78] sm:$0xff] %vm700_vm12, %v796_v3 }
 0x2ba PF: > { %s16_s22 = sadd.s32 1, %s1050_s22   ;;  %s1565_s18 = smov %s1042_s20 }
 0x2bb   : > { %p13_p10 = scmp.ge.s32.totalorder %s16_s22, 6   ;;  %s1566_s19 = smov %s1046_s21 }
 0x2bc   : > { %s1567_s20 = smov %s1570_s23  ;;  %s1568_s21 = smov %s1574_s24 }
 0x2bd   :  { %15 = sbr.rel (!%p13_p10) target bundleno = 3 (0x3), region = 74 }

</bundles_post_ra>
